<compile_context>
chip_gen: v7x
topology: tpu7x:2x2x1
jax: 0.10.0
libtpu: 0.0.40
codegen_flags: <defaults>
</compile_context>

<pallas_src>
import functools

import jax
import jax.numpy as jnp
from jax.experimental import pallas as pl
from jax.experimental.pallas import tpu as pltpu


def _layer_norm(x, gamma, beta, eps=1e-5):
    mu = jnp.mean(x, axis=-1, keepdims=True)
    var = jnp.mean((x - mu) * (x - mu), axis=-1, keepdims=True)
    return (x - mu) * jax.lax.rsqrt(var + eps) * gamma + beta


def r_critic_kernel(x_ref, h_ref, m_ref,
                    w1_ref, w2_ref, wih_ref, whh_ref,
                    vd_ref, vh_ref, vc_ref,
                    out_ref, *, D, H):
    """One batch tile of the fused R_Critic forward pass.

    x_ref   [tb, D]   observation tile
    h_ref   [tb, H]   previous GRU hidden state tile
    m_ref   [tb, 1]   reset mask tile
    w1_ref  [D, H]    fc1^T          w2_ref  [H, H]  fc2^T
    wih_ref [H, 3H]   GRU W_ih^T (gates r|z|n)   whh_ref [H, 3H] GRU W_hh^T
    vd_ref  [8, D]    rows: feature-LN gamma, beta
    vh_ref  [16, H]   rows: b1, g1, be1, b2, g2, be2, gr, ber, v_out row; [9,0]=v_out bias
    vc_ref  [8, 3H]   rows: b_ih, b_hh
    out_ref [tb, 2H]  lane-dense slab: cols 0:H = new hidden, col H = value
    """
    f32 = jnp.float32
    C = 3 * H

    x = x_ref[...]                                   # [tb, D]
    h_prev = h_ref[...] * m_ref[...]                 # [tb, H]; mask resets hidden state

    # ---- MLPBase: feature LayerNorm, then 2 x (Linear -> ReLU -> LayerNorm) ----
    x = _layer_norm(x, vd_ref[0:1, :], vd_ref[1:2, :])

    x = jnp.dot(x, w1_ref[...], preferred_element_type=f32) + vh_ref[0:1, :]
    x = _layer_norm(jnp.maximum(x, 0.0), vh_ref[1:2, :], vh_ref[2:3, :])

    x = jnp.dot(x, w2_ref[...], preferred_element_type=f32) + vh_ref[3:4, :]
    x = _layer_norm(jnp.maximum(x, 0.0), vh_ref[4:5, :], vh_ref[5:6, :])

    # ---- RNNLayer: single-step GRU, gates r|z|n fused into one matmul per operand ----
    gi = jnp.dot(x, wih_ref[...], preferred_element_type=f32) + vc_ref[0:1, :]       # [tb, 3H]
    gh = jnp.dot(h_prev, whh_ref[...], preferred_element_type=f32) + vc_ref[1:2, :]  # [tb, 3H]
    r = jax.nn.sigmoid(gi[:, 0:H] + gh[:, 0:H])
    z = jax.nn.sigmoid(gi[:, H:2 * H] + gh[:, H:2 * H])
    n = jnp.tanh(gi[:, 2 * H:C] + r * gh[:, 2 * H:C])
    h_new = (1.0 - z) * n + z * h_prev                                                # [tb, H]

    feat = _layer_norm(h_new, vh_ref[6:7, :], vh_ref[7:8, :])

    # ---- v_out: Linear(H, 1) as VPU multiply + lane reduction (no N=1 MXU pass) ----
    value = jnp.sum(feat * vh_ref[8:9, :], axis=-1, keepdims=True) + vh_ref[9:10, 0:1]

    # ---- lane-dense [tb, 2H] output block: sub-slice stores, no concatenate ----
    out_ref[:, 0:H] = h_new
    out_ref[:, H:H + 1] = value


def _choose_tile(B, tb):
    """Tile must be a multiple of 8; keep >= 2 grid steps where possible (v7x megacore)."""
    tb = max(8, (tb // 8) * 8)
    while tb > 8 and B <= tb:
        tb //= 2
    return max(8, (tb // 8) * 8)


def r_critic_forward(cent_obs, rnn_states, masks, params, *, D, H, tb=256):
    """cent_obs [B, D], rnn_states [B, 1, H], masks [B, 1] -> (values [B,1], rnn_states [B,1,H])."""
    w1, w2, wih, whh, vd, vh, vc = params
    B = cent_obs.shape[0]
    h_flat = rnn_states.reshape(B, H)   # recurrent_N == 1; layout plumbing only

    tb = _choose_tile(B, tb)
    Bp = pl.cdiv(B, tb) * tb
    if Bp != B:                         # pad ragged batches instead of asserting
        pad = ((0, Bp - B), (0, 0))
        cent_obs = jnp.pad(cent_obs, pad)
        h_flat = jnp.pad(h_flat, pad)
        masks = jnp.pad(masks, pad)

    out = pl.pallas_call(
        functools.partial(r_critic_kernel, D=D, H=H),
        out_shape=jax.ShapeDtypeStruct((Bp, 2 * H), jnp.float32),
        grid_spec=pltpu.PrefetchScalarGridSpec(
            num_scalar_prefetch=0,
            grid=(Bp // tb,),
            in_specs=[
                pl.BlockSpec((tb, D), lambda i: (i, 0)),       # obs tile
                pl.BlockSpec((tb, H), lambda i: (i, 0)),       # rnn-state tile
                pl.BlockSpec((tb, 1), lambda i: (i, 0)),       # mask tile
                pl.BlockSpec(w1.shape, lambda i: (0, 0)),      # fc1^T      (VMEM-resident, 1 DMA)
                pl.BlockSpec(w2.shape, lambda i: (0, 0)),      # fc2^T
                pl.BlockSpec(wih.shape, lambda i: (0, 0)),     # GRU W_ih^T
                pl.BlockSpec(whh.shape, lambda i: (0, 0)),     # GRU W_hh^T
                pl.BlockSpec(vd.shape, lambda i: (0, 0)),      # feature-LN params
                pl.BlockSpec(vh.shape, lambda i: (0, 0)),      # H-wide bias/LN rows + v_out
                pl.BlockSpec(vc.shape, lambda i: (0, 0)),      # GRU biases
            ],
            out_specs=pl.BlockSpec((tb, 2 * H), lambda i: (i, 0)),
        ),
        compiler_params=pltpu.CompilerParams(
            dimension_semantics=("parallel",)),   # v7x: shard batch grid across both TCs
    )(cent_obs, h_flat, masks, w1, w2, wih, whh, vd, vh, vc)

    values = out[:B, H:H + 1]
    new_rnn_states = out[:B, 0:H].reshape(B, 1, H)
    return values, new_rnn_states


def init_params(key, D, H):
    """Deterministic init (uniform +-1/sqrt(fan_in)); weights stored pre-transposed [in, out]."""
    ks = jax.random.split(key, 5)

    def linear(k, fan_in, fan_out):
        kw, kb = jax.random.split(k)
        bound = fan_in ** -0.5
        w = jax.random.uniform(kw, (fan_in, fan_out), jnp.float32, -bound, bound)
        b = jax.random.uniform(kb, (fan_out,), jnp.float32, -bound, bound)
        return w, b

    ones, zeros = lambda n: jnp.ones((n,), jnp.float32), lambda n: jnp.zeros((n,), jnp.float32)
    fn_g, fn_b = ones(D), zeros(D)                 # feature_norm (PyTorch LN default affine)
    w1, b1 = linear(ks[0], D, H)
    g1, be1 = ones(H), zeros(H)
    w2, b2 = linear(ks[1], H, H)
    g2, be2 = ones(H), zeros(H)
    wih, bih = linear(ks[2], H, 3 * H)             # GRU input->hidden, gates [r|z|n]
    whh, bhh = linear(ks[3], H, 3 * H)             # GRU hidden->hidden
    gr, ber = ones(H), zeros(H)                    # post-RNN LayerNorm
    wv, bv = linear(ks[4], H, 1)                   # v_out
    return (fn_g, fn_b, w1, b1, g1, be1, w2, b2, g2, be2,
            wih, bih, whh, bhh, gr, ber, wv, bv)


def pack_params(raw, D, H):
    """Lane-aligned per-matmul weights + small bias/LN row tables (no sub-lane slab slices)."""
    (fn_g, fn_b, w1, b1, g1, be1, w2, b2, g2, be2,
     wih, bih, whh, bhh, gr, ber, wv, bv) = raw
    C = 3 * H

    vd = jnp.zeros((8, D), jnp.float32).at[0].set(fn_g).at[1].set(fn_b)

    vh = jnp.zeros((16, H), jnp.float32)
    for i, v in enumerate([b1, g1, be1, b2, g2, be2, gr, ber, wv.reshape(H)]):
        vh = vh.at[i].set(v)
    vh = vh.at[9, 0].set(bv[0])

    vc = jnp.zeros((8, C), jnp.float32).at[0].set(bih).at[1].set(bhh)

    return (w1, w2, wih, whh, vd, vh, vc)


def reference_forward(cent_obs, rnn_states, masks, raw, H):
    """Pure-JAX reference matching R_Critic.forward for the implemented configuration."""
    (fn_g, fn_b, w1, b1, g1, be1, w2, b2, g2, be2,
     wih, bih, whh, bhh, gr, ber, wv, bv) = raw

    def ln(x, g, b):
        mu = jnp.mean(x, -1, keepdims=True)
        var = jnp.mean((x - mu) ** 2, -1, keepdims=True)
        return (x - mu) * jax.lax.rsqrt(var + 1e-5) * g + b

    x = ln(cent_obs, fn_g, fn_b)
    x = ln(jnp.maximum(x @ w1 + b1, 0.0), g1, be1)
    x = ln(jnp.maximum(x @ w2 + b2, 0.0), g2, be2)

    B = cent_obs.shape[0]
    h_prev = rnn_states.reshape(B, H) * masks
    gi = x @ wih + bih
    gh = h_prev @ whh + bhh
    r = jax.nn.sigmoid(gi[:, 0:H] + gh[:, 0:H])
    z = jax.nn.sigmoid(gi[:, H:2 * H] + gh[:, H:2 * H])
    n = jnp.tanh(gi[:, 2 * H:] + r * gh[:, 2 * H:])
    h_new = (1.0 - z) * n + z * h_prev

    values = ln(h_new, gr, ber) @ wv + bv
    return values, h_new.reshape(B, 1, H)


if __name__ == "__main__":
    # Small, module-consistent shapes: hidden_size=64, recurrent_N=1, 32-dim centralized obs.
    B, D, H = 16, 32, 64

    key = jax.random.PRNGKey(0)
    k_par, k_obs, k_hid, k_msk = jax.random.split(key, 4)

    raw = init_params(k_par, D, H)
    params = pack_params(raw, D, H)

    cent_obs = jax.random.normal(k_obs, (B, D), jnp.float32)
    rnn_states = jax.random.normal(k_hid, (B, 1, H), jnp.float32)
    masks = (jax.random.uniform(k_msk, (B, 1)) > 0.25).astype(jnp.float32)

    # One jit around pad -> pallas_call -> slab slicing so the output slab isn't
    # re-read by a separate executable; in training, fuse with the consumer instead.
    forward = jax.jit(functools.partial(r_critic_forward, D=D, H=H))

    values, new_rnn = forward(cent_obs, rnn_states, masks, params)
    values = jax.block_until_ready(values)
    new_rnn = jax.block_until_ready(new_rnn)

    v_ref, h_ref = reference_forward(cent_obs, rnn_states, masks, raw, H)
    assert values.shape == (B, 1)
    assert new_rnn.shape == (B, 1, H)
    assert jnp.allclose(values, v_ref, atol=1e-3, rtol=1e-3)
    assert jnp.allclose(new_rnn, h_ref, atol=1e-3, rtol=1e-3)

    print("KERNEL_OK")
</pallas_src>

<mosaic_0001>
module attributes {stable_mosaic.version = 11 : i64} {
  func.func @r_critic_kernel(%arg0: i32, %arg1: memref<8x32xf32, #tpu.memory_space<vmem>>, %arg2: memref<8x64xf32, #tpu.memory_space<vmem>>, %arg3: memref<8x1xf32, #tpu.memory_space<vmem>>, %arg4: memref<32x64xf32, #tpu.memory_space<vmem>>, %arg5: memref<64x64xf32, #tpu.memory_space<vmem>>, %arg6: memref<64x192xf32, #tpu.memory_space<vmem>>, %arg7: memref<64x192xf32, #tpu.memory_space<vmem>>, %arg8: memref<8x32xf32, #tpu.memory_space<vmem>>, %arg9: memref<16x64xf32, #tpu.memory_space<vmem>>, %arg10: memref<8x192xf32, #tpu.memory_space<vmem>>, %arg11: memref<8x128xf32, #tpu.memory_space<vmem>>) attributes {dimension_semantics = [#tpu.dimension_semantics<parallel>], iteration_bounds = array<i64: 2>, scalar_prefetch = 0 : i64, scratch_operands = 0 : i64, tpu.core_type = #tpu.core_type<tc>, window_params = [{transform_indices = @transform_0, window_bounds = array<i64: 8, 32>}, {transform_indices = @transform_1, window_bounds = array<i64: 8, 64>}, {transform_indices = @transform_2, window_bounds = array<i64: 8, 1>}, {pipeline_mode = #tpu.pipeline_mode<synchronous>, transform_indices = @transform_3, window_bounds = array<i64: 32, 64>}, {pipeline_mode = #tpu.pipeline_mode<synchronous>, transform_indices = @transform_4, window_bounds = array<i64: 64, 64>}, {pipeline_mode = #tpu.pipeline_mode<synchronous>, transform_indices = @transform_5, window_bounds = array<i64: 64, 192>}, {pipeline_mode = #tpu.pipeline_mode<synchronous>, transform_indices = @transform_6, window_bounds = array<i64: 64, 192>}, {pipeline_mode = #tpu.pipeline_mode<synchronous>, transform_indices = @transform_7, window_bounds = array<i64: 8, 32>}, {pipeline_mode = #tpu.pipeline_mode<synchronous>, transform_indices = @transform_8, window_bounds = array<i64: 16, 64>}, {pipeline_mode = #tpu.pipeline_mode<synchronous>, transform_indices = @transform_9, window_bounds = array<i64: 8, 192>}, {transform_indices = @transform_10, window_bounds = array<i64: 8, 128>}]} {
    %c0 = arith.constant 0 : index
    %c0_0 = arith.constant 0 : index
    %0 = vector.load %arg1[%c0, %c0_0] : memref<8x32xf32, #tpu.memory_space<vmem>>, vector<8x32xf32>
    %c0_1 = arith.constant 0 : index
    %c0_2 = arith.constant 0 : index
    %1 = vector.load %arg2[%c0_1, %c0_2] : memref<8x64xf32, #tpu.memory_space<vmem>>, vector<8x64xf32>
    %c0_3 = arith.constant 0 : index
    %c0_4 = arith.constant 0 : index
    %2 = vector.load %arg3[%c0_3, %c0_4] : memref<8x1xf32, #tpu.memory_space<vmem>>, vector<8x1xf32>
    %3 = vector.broadcast %2 : vector<8x1xf32> to vector<8x64xf32>
    %4 = arith.mulf %1, %3 : vector<8x64xf32>
    %c0_5 = arith.constant 0 : index
    %c0_6 = arith.constant 0 : index
    %5 = vector.load %arg8[%c0_5, %c0_6] : memref<8x32xf32, #tpu.memory_space<vmem>>, vector<1x32xf32>
    %c1 = arith.constant 1 : index
    %c0_7 = arith.constant 0 : index
    %6 = vector.load %arg8[%c1, %c0_7] : memref<8x32xf32, #tpu.memory_space<vmem>>, vector<1x32xf32>
    %cst = arith.constant dense<0.000000e+00> : vector<8xf32>
    %7 = vector.multi_reduction <add>, %0, %cst [1] : vector<8x32xf32> to vector<8xf32>
    %8 = vector.shape_cast %7 : vector<8xf32> to vector<8x1xf32>
    %cst_8 = arith.constant 3.200000e+01 : f32
    %9 = vector.broadcast %cst_8 : f32 to vector<8x1xf32>
    %10 = arith.divf %8, %9 : vector<8x1xf32>
    %11 = vector.broadcast %10 : vector<8x1xf32> to vector<8x32xf32>
    %12 = arith.subf %0, %11 : vector<8x32xf32>
    %13 = vector.broadcast %10 : vector<8x1xf32> to vector<8x32xf32>
    %14 = arith.subf %0, %13 : vector<8x32xf32>
    %15 = arith.mulf %12, %14 : vector<8x32xf32>
    %cst_9 = arith.constant dense<0.000000e+00> : vector<8xf32>
    %16 = vector.multi_reduction <add>, %15, %cst_9 [1] : vector<8x32xf32> to vector<8xf32>
    %17 = vector.shape_cast %16 : vector<8xf32> to vector<8x1xf32>
    %cst_10 = arith.constant 3.200000e+01 : f32
    %18 = vector.broadcast %cst_10 : f32 to vector<8x1xf32>
    %19 = arith.divf %17, %18 : vector<8x1xf32>
    %20 = vector.broadcast %10 : vector<8x1xf32> to vector<8x32xf32>
    %21 = arith.subf %0, %20 : vector<8x32xf32>
    %cst_11 = arith.constant 9.99999974E-6 : f32
    %22 = vector.broadcast %cst_11 : f32 to vector<8x1xf32>
    %23 = arith.addf %19, %22 : vector<8x1xf32>
    %24 = math.rsqrt %23 : vector<8x1xf32>
    %25 = vector.broadcast %24 : vector<8x1xf32> to vector<8x32xf32>
    %26 = arith.mulf %21, %25 : vector<8x32xf32>
    %27 = vector.broadcast %5 : vector<1x32xf32> to vector<8x32xf32>
    %28 = arith.mulf %26, %27 : vector<8x32xf32>
    %29 = vector.broadcast %6 : vector<1x32xf32> to vector<8x32xf32>
    %30 = arith.addf %28, %29 : vector<8x32xf32>
    %c0_12 = arith.constant 0 : index
    %c0_13 = arith.constant 0 : index
    %31 = vector.load %arg4[%c0_12, %c0_13] : memref<32x64xf32, #tpu.memory_space<vmem>>, vector<32x64xf32>
    %cst_14 = arith.constant dense<0.000000e+00> : vector<8x64xf32>
    %32 = tpu.matmul %30, %31, %cst_14 {dimension_numbers = #tpu.dot_dimension_numbers<[1], [0], [0], [1], [0, 0, 1, 1], [], []>} : vector<8x32xf32>, vector<32x64xf32>, vector<8x64xf32> -> vector<8x64xf32>
    %c0_15 = arith.constant 0 : index
    %c0_16 = arith.constant 0 : index
    %33 = vector.load %arg9[%c0_15, %c0_16] : memref<16x64xf32, #tpu.memory_space<vmem>>, vector<1x64xf32>
    %34 = vector.broadcast %33 : vector<1x64xf32> to vector<8x64xf32>
    %35 = arith.addf %32, %34 : vector<8x64xf32>
    %cst_17 = arith.constant 0.000000e+00 : f32
    %36 = vector.broadcast %cst_17 : f32 to vector<8x64xf32>
    %37 = arith.maximumf %35, %36 : vector<8x64xf32>
    %c1_18 = arith.constant 1 : index
    %c0_19 = arith.constant 0 : index
    %38 = vector.load %arg9[%c1_18, %c0_19] : memref<16x64xf32, #tpu.memory_space<vmem>>, vector<1x64xf32>
    %c2 = arith.constant 2 : index
    %c0_20 = arith.constant 0 : index
    %39 = vector.load %arg9[%c2, %c0_20] : memref<16x64xf32, #tpu.memory_space<vmem>>, vector<1x64xf32>
    %cst_21 = arith.constant dense<0.000000e+00> : vector<8xf32>
    %40 = vector.multi_reduction <add>, %37, %cst_21 [1] : vector<8x64xf32> to vector<8xf32>
    %41 = vector.shape_cast %40 : vector<8xf32> to vector<8x1xf32>
    %cst_22 = arith.constant 6.400000e+01 : f32
    %42 = vector.broadcast %cst_22 : f32 to vector<8x1xf32>
    %43 = arith.divf %41, %42 : vector<8x1xf32>
    %44 = vector.broadcast %43 : vector<8x1xf32> to vector<8x64xf32>
    %45 = arith.subf %37, %44 : vector<8x64xf32>
    %46 = vector.broadcast %43 : vector<8x1xf32> to vector<8x64xf32>
    %47 = arith.subf %37, %46 : vector<8x64xf32>
    %48 = arith.mulf %45, %47 : vector<8x64xf32>
    %cst_23 = arith.constant dense<0.000000e+00> : vector<8xf32>
    %49 = vector.multi_reduction <add>, %48, %cst_23 [1] : vector<8x64xf32> to vector<8xf32>
    %50 = vector.shape_cast %49 : vector<8xf32> to vector<8x1xf32>
    %cst_24 = arith.constant 6.400000e+01 : f32
    %51 = vector.broadcast %cst_24 : f32 to vector<8x1xf32>
    %52 = arith.divf %50, %51 : vector<8x1xf32>
    %53 = vector.broadcast %43 : vector<8x1xf32> to vector<8x64xf32>
    %54 = arith.subf %37, %53 : vector<8x64xf32>
    %cst_25 = arith.constant 9.99999974E-6 : f32
    %55 = vector.broadcast %cst_25 : f32 to vector<8x1xf32>
    %56 = arith.addf %52, %55 : vector<8x1xf32>
    %57 = math.rsqrt %56 : vector<8x1xf32>
    %58 = vector.broadcast %57 : vector<8x1xf32> to vector<8x64xf32>
    %59 = arith.mulf %54, %58 : vector<8x64xf32>
    %60 = vector.broadcast %38 : vector<1x64xf32> to vector<8x64xf32>
    %61 = arith.mulf %59, %60 : vector<8x64xf32>
    %62 = vector.broadcast %39 : vector<1x64xf32> to vector<8x64xf32>
    %63 = arith.addf %61, %62 : vector<8x64xf32>
    %c0_26 = arith.constant 0 : index
    %c0_27 = arith.constant 0 : index
    %64 = vector.load %arg5[%c0_26, %c0_27] : memref<64x64xf32, #tpu.memory_space<vmem>>, vector<64x64xf32>
    %cst_28 = arith.constant dense<0.000000e+00> : vector<8x64xf32>
    %65 = tpu.matmul %63, %64, %cst_28 {dimension_numbers = #tpu.dot_dimension_numbers<[1], [0], [0], [1], [0, 0, 1, 1], [], []>} : vector<8x64xf32>, vector<64x64xf32>, vector<8x64xf32> -> vector<8x64xf32>
    %c3 = arith.constant 3 : index
    %c0_29 = arith.constant 0 : index
    %66 = vector.load %arg9[%c3, %c0_29] : memref<16x64xf32, #tpu.memory_space<vmem>>, vector<1x64xf32>
    %67 = vector.broadcast %66 : vector<1x64xf32> to vector<8x64xf32>
    %68 = arith.addf %65, %67 : vector<8x64xf32>
    %cst_30 = arith.constant 0.000000e+00 : f32
    %69 = vector.broadcast %cst_30 : f32 to vector<8x64xf32>
    %70 = arith.maximumf %68, %69 : vector<8x64xf32>
    %c4 = arith.constant 4 : index
    %c0_31 = arith.constant 0 : index
    %71 = vector.load %arg9[%c4, %c0_31] : memref<16x64xf32, #tpu.memory_space<vmem>>, vector<1x64xf32>
    %c5 = arith.constant 5 : index
    %c0_32 = arith.constant 0 : index
    %72 = vector.load %arg9[%c5, %c0_32] : memref<16x64xf32, #tpu.memory_space<vmem>>, vector<1x64xf32>
    %cst_33 = arith.constant dense<0.000000e+00> : vector<8xf32>
    %73 = vector.multi_reduction <add>, %70, %cst_33 [1] : vector<8x64xf32> to vector<8xf32>
    %74 = vector.shape_cast %73 : vector<8xf32> to vector<8x1xf32>
    %cst_34 = arith.constant 6.400000e+01 : f32
    %75 = vector.broadcast %cst_34 : f32 to vector<8x1xf32>
    %76 = arith.divf %74, %75 : vector<8x1xf32>
    %77 = vector.broadcast %76 : vector<8x1xf32> to vector<8x64xf32>
    %78 = arith.subf %70, %77 : vector<8x64xf32>
    %79 = vector.broadcast %76 : vector<8x1xf32> to vector<8x64xf32>
    %80 = arith.subf %70, %79 : vector<8x64xf32>
    %81 = arith.mulf %78, %80 : vector<8x64xf32>
    %cst_35 = arith.constant dense<0.000000e+00> : vector<8xf32>
    %82 = vector.multi_reduction <add>, %81, %cst_35 [1] : vector<8x64xf32> to vector<8xf32>
    %83 = vector.shape_cast %82 : vector<8xf32> to vector<8x1xf32>
    %cst_36 = arith.constant 6.400000e+01 : f32
    %84 = vector.broadcast %cst_36 : f32 to vector<8x1xf32>
    %85 = arith.divf %83, %84 : vector<8x1xf32>
    %86 = vector.broadcast %76 : vector<8x1xf32> to vector<8x64xf32>
    %87 = arith.subf %70, %86 : vector<8x64xf32>
    %cst_37 = arith.constant 9.99999974E-6 : f32
    %88 = vector.broadcast %cst_37 : f32 to vector<8x1xf32>
    %89 = arith.addf %85, %88 : vector<8x1xf32>
    %90 = math.rsqrt %89 : vector<8x1xf32>
    %91 = vector.broadcast %90 : vector<8x1xf32> to vector<8x64xf32>
    %92 = arith.mulf %87, %91 : vector<8x64xf32>
    %93 = vector.broadcast %71 : vector<1x64xf32> to vector<8x64xf32>
    %94 = arith.mulf %92, %93 : vector<8x64xf32>
    %95 = vector.broadcast %72 : vector<1x64xf32> to vector<8x64xf32>
    %96 = arith.addf %94, %95 : vector<8x64xf32>
    %c0_38 = arith.constant 0 : index
    %c0_39 = arith.constant 0 : index
    %97 = vector.load %arg6[%c0_38, %c0_39] : memref<64x192xf32, #tpu.memory_space<vmem>>, vector<64x192xf32>
    %cst_40 = arith.constant dense<0.000000e+00> : vector<8x192xf32>
    %98 = tpu.matmul %96, %97, %cst_40 {dimension_numbers = #tpu.dot_dimension_numbers<[1], [0], [0], [1], [0, 0, 1, 1], [], []>} : vector<8x64xf32>, vector<64x192xf32>, vector<8x192xf32> -> vector<8x192xf32>
    %c0_41 = arith.constant 0 : index
    %c0_42 = arith.constant 0 : index
    %99 = vector.load %arg10[%c0_41, %c0_42] : memref<8x192xf32, #tpu.memory_space<vmem>>, vector<1x192xf32>
    %100 = vector.broadcast %99 : vector<1x192xf32> to vector<8x192xf32>
    %101 = arith.addf %98, %100 : vector<8x192xf32>
    %c0_43 = arith.constant 0 : index
    %c0_44 = arith.constant 0 : index
    %102 = vector.load %arg7[%c0_43, %c0_44] : memref<64x192xf32, #tpu.memory_space<vmem>>, vector<64x192xf32>
    %cst_45 = arith.constant dense<0.000000e+00> : vector<8x192xf32>
    %103 = tpu.matmul %4, %102, %cst_45 {dimension_numbers = #tpu.dot_dimension_numbers<[1], [0], [0], [1], [0, 0, 1, 1], [], []>} : vector<8x64xf32>, vector<64x192xf32>, vector<8x192xf32> -> vector<8x192xf32>
    %c1_46 = arith.constant 1 : index
    %c0_47 = arith.constant 0 : index
    %104 = vector.load %arg10[%c1_46, %c0_47] : memref<8x192xf32, #tpu.memory_space<vmem>>, vector<1x192xf32>
    %105 = vector.broadcast %104 : vector<1x192xf32> to vector<8x192xf32>
    %106 = arith.addf %103, %105 : vector<8x192xf32>
    %107 = vector.extract_strided_slice %101 {offsets = [0, 0], sizes = [8, 64], strides = [1, 1]} : vector<8x192xf32> to vector<8x64xf32>
    %108 = vector.extract_strided_slice %106 {offsets = [0, 0], sizes = [8, 64], strides = [1, 1]} : vector<8x192xf32> to vector<8x64xf32>
    %109 = arith.addf %107, %108 : vector<8x64xf32>
    %110 = arith.negf %109 : vector<8x64xf32>
    %111 = math.exp %110 : vector<8x64xf32>
    %cst_48 = arith.constant 1.000000e+00 : f32
    %112 = vector.broadcast %cst_48 : f32 to vector<8x64xf32>
    %113 = arith.addf %112, %111 : vector<8x64xf32>
    %114 = arith.divf %112, %113 : vector<8x64xf32>
    %115 = vector.extract_strided_slice %101 {offsets = [0, 64], sizes = [8, 64], strides = [1, 1]} : vector<8x192xf32> to vector<8x64xf32>
    %116 = vector.extract_strided_slice %106 {offsets = [0, 64], sizes = [8, 64], strides = [1, 1]} : vector<8x192xf32> to vector<8x64xf32>
    %117 = arith.addf %115, %116 : vector<8x64xf32>
    %118 = arith.negf %117 : vector<8x64xf32>
    %119 = math.exp %118 : vector<8x64xf32>
    %cst_49 = arith.constant 1.000000e+00 : f32
    %120 = vector.broadcast %cst_49 : f32 to vector<8x64xf32>
    %121 = arith.addf %120, %119 : vector<8x64xf32>
    %122 = arith.divf %120, %121 : vector<8x64xf32>
    %123 = vector.extract_strided_slice %101 {offsets = [0, 128], sizes = [8, 64], strides = [1, 1]} : vector<8x192xf32> to vector<8x64xf32>
    %124 = vector.extract_strided_slice %106 {offsets = [0, 128], sizes = [8, 64], strides = [1, 1]} : vector<8x192xf32> to vector<8x64xf32>
    %125 = arith.mulf %114, %124 : vector<8x64xf32>
    %126 = arith.addf %123, %125 : vector<8x64xf32>
    %127 = math.tanh %126 : vector<8x64xf32>
    %cst_50 = arith.constant 1.000000e+00 : f32
    %128 = vector.broadcast %cst_50 : f32 to vector<8x64xf32>
    %129 = arith.subf %128, %122 : vector<8x64xf32>
    %130 = arith.mulf %129, %127 : vector<8x64xf32>
    %131 = arith.mulf %122, %4 : vector<8x64xf32>
    %132 = arith.addf %130, %131 : vector<8x64xf32>
    %c6 = arith.constant 6 : index
    %c0_51 = arith.constant 0 : index
    %133 = vector.load %arg9[%c6, %c0_51] : memref<16x64xf32, #tpu.memory_space<vmem>>, vector<1x64xf32>
    %c7 = arith.constant 7 : index
    %c0_52 = arith.constant 0 : index
    %134 = vector.load %arg9[%c7, %c0_52] : memref<16x64xf32, #tpu.memory_space<vmem>>, vector<1x64xf32>
    %cst_53 = arith.constant dense<0.000000e+00> : vector<8xf32>
    %135 = vector.multi_reduction <add>, %132, %cst_53 [1] : vector<8x64xf32> to vector<8xf32>
    %136 = vector.shape_cast %135 : vector<8xf32> to vector<8x1xf32>
    %cst_54 = arith.constant 6.400000e+01 : f32
    %137 = vector.broadcast %cst_54 : f32 to vector<8x1xf32>
    %138 = arith.divf %136, %137 : vector<8x1xf32>
    %139 = vector.broadcast %138 : vector<8x1xf32> to vector<8x64xf32>
    %140 = arith.subf %132, %139 : vector<8x64xf32>
    %141 = vector.broadcast %138 : vector<8x1xf32> to vector<8x64xf32>
    %142 = arith.subf %132, %141 : vector<8x64xf32>
    %143 = arith.mulf %140, %142 : vector<8x64xf32>
    %cst_55 = arith.constant dense<0.000000e+00> : vector<8xf32>
    %144 = vector.multi_reduction <add>, %143, %cst_55 [1] : vector<8x64xf32> to vector<8xf32>
    %145 = vector.shape_cast %144 : vector<8xf32> to vector<8x1xf32>
    %cst_56 = arith.constant 6.400000e+01 : f32
    %146 = vector.broadcast %cst_56 : f32 to vector<8x1xf32>
    %147 = arith.divf %145, %146 : vector<8x1xf32>
    %148 = vector.broadcast %138 : vector<8x1xf32> to vector<8x64xf32>
    %149 = arith.subf %132, %148 : vector<8x64xf32>
    %cst_57 = arith.constant 9.99999974E-6 : f32
    %150 = vector.broadcast %cst_57 : f32 to vector<8x1xf32>
    %151 = arith.addf %147, %150 : vector<8x1xf32>
    %152 = math.rsqrt %151 : vector<8x1xf32>
    %153 = vector.broadcast %152 : vector<8x1xf32> to vector<8x64xf32>
    %154 = arith.mulf %149, %153 : vector<8x64xf32>
    %155 = vector.broadcast %133 : vector<1x64xf32> to vector<8x64xf32>
    %156 = arith.mulf %154, %155 : vector<8x64xf32>
    %157 = vector.broadcast %134 : vector<1x64xf32> to vector<8x64xf32>
    %158 = arith.addf %156, %157 : vector<8x64xf32>
    %c8 = arith.constant 8 : index
    %c0_58 = arith.constant 0 : index
    %159 = vector.load %arg9[%c8, %c0_58] : memref<16x64xf32, #tpu.memory_space<vmem>>, vector<1x64xf32>
    %160 = vector.broadcast %159 : vector<1x64xf32> to vector<8x64xf32>
    %161 = arith.mulf %158, %160 : vector<8x64xf32>
    %cst_59 = arith.constant dense<0.000000e+00> : vector<8xf32>
    %162 = vector.multi_reduction <add>, %161, %cst_59 [1] : vector<8x64xf32> to vector<8xf32>
    %163 = vector.shape_cast %162 : vector<8xf32> to vector<8x1xf32>
    %c9 = arith.constant 9 : index
    %c0_60 = arith.constant 0 : index
    %164 = vector.load %arg9[%c9, %c0_60] : memref<16x64xf32, #tpu.memory_space<vmem>>, vector<1x1xf32>
    %165 = vector.broadcast %164 : vector<1x1xf32> to vector<8x1xf32>
    %166 = arith.addf %163, %165 : vector<8x1xf32>
    %c0_61 = arith.constant 0 : index
    %c0_62 = arith.constant 0 : index
    %167 = vector.load %arg11[%c0_61, %c0_62] : memref<8x128xf32, #tpu.memory_space<vmem>>, vector<8x64xf32>
    tpu.vector_store %arg11[%c0_61, %c0_62], %132 {strides = array<i32>} : memref<8x128xf32, #tpu.memory_space<vmem>>, vector<8x64xf32>,
    %c0_63 = arith.constant 0 : index
    %c64 = arith.constant 64 : index
    %168 = vector.load %arg11[%c0_63, %c64] : memref<8x128xf32, #tpu.memory_space<vmem>>, vector<8x1xf32>
    tpu.vector_store %arg11[%c0_63, %c64], %166 {strides = array<i32>} : memref<8x128xf32, #tpu.memory_space<vmem>>, vector<8x1xf32>,
    return
  }
  func.func @transform_0(%arg0: i32) -> (i32, i32) {
    %c0_i32 = arith.constant 0 : i32
    %c0_i32_0 = arith.constant 0 : i32
    return %arg0, %c0_i32 : i32, i32
  }
  func.func @transform_1(%arg0: i32) -> (i32, i32) {
    %c0_i32 = arith.constant 0 : i32
    %c0_i32_0 = arith.constant 0 : i32
    return %arg0, %c0_i32 : i32, i32
  }
  func.func @transform_2(%arg0: i32) -> (i32, i32) {
    %c0_i32 = arith.constant 0 : i32
    %c0_i32_0 = arith.constant 0 : i32
    return %arg0, %c0_i32 : i32, i32
  }
  func.func @transform_3(%arg0: i32) -> (i32, i32) {
    %c0_i32 = arith.constant 0 : i32
    %c0_i32_0 = arith.constant 0 : i32
    %c0_i32_1 = arith.constant 0 : i32
    return %c0_i32, %c0_i32_0 : i32, i32
  }
  func.func @transform_4(%arg0: i32) -> (i32, i32) {
    %c0_i32 = arith.constant 0 : i32
    %c0_i32_0 = arith.constant 0 : i32
    %c0_i32_1 = arith.constant 0 : i32
    return %c0_i32, %c0_i32_0 : i32, i32
  }
  func.func @transform_5(%arg0: i32) -> (i32, i32) {
    %c0_i32 = arith.constant 0 : i32
    %c0_i32_0 = arith.constant 0 : i32
    %c0_i32_1 = arith.constant 0 : i32
    return %c0_i32, %c0_i32_0 : i32, i32
  }
  func.func @transform_6(%arg0: i32) -> (i32, i32) {
    %c0_i32 = arith.constant 0 : i32
    %c0_i32_0 = arith.constant 0 : i32
    %c0_i32_1 = arith.constant 0 : i32
    return %c0_i32, %c0_i32_0 : i32, i32
  }
  func.func @transform_7(%arg0: i32) -> (i32, i32) {
    %c0_i32 = arith.constant 0 : i32
    %c0_i32_0 = arith.constant 0 : i32
    %c0_i32_1 = arith.constant 0 : i32
    return %c0_i32, %c0_i32_0 : i32, i32
  }
  func.func @transform_8(%arg0: i32) -> (i32, i32) {
    %c0_i32 = arith.constant 0 : i32
    %c0_i32_0 = arith.constant 0 : i32
    %c0_i32_1 = arith.constant 0 : i32
    return %c0_i32, %c0_i32_0 : i32, i32
  }
  func.func @transform_9(%arg0: i32) -> (i32, i32) {
    %c0_i32 = arith.constant 0 : i32
    %c0_i32_0 = arith.constant 0 : i32
    %c0_i32_1 = arith.constant 0 : i32
    return %c0_i32, %c0_i32_0 : i32, i32
  }
  func.func @transform_10(%arg0: i32) -> (i32, i32) {
    %c0_i32 = arith.constant 0 : i32
    %c0_i32_0 = arith.constant 0 : i32
    return %arg0, %c0_i32 : i32, i32
  }
}

</mosaic_0001>

<bundles_post_ra>
// kernel: r_critic_forward.1
= control target key start
LH: loop header
LB: loop body
LE: loop exit
PB: predicated region body
PF: predicated region fallthrough
CT: control target
= control target key end

     0   :  { %s2159_s0 = inlined_call_operand.hbm [shape: f32[16,32], index: 0, kind: input, shape index: {}]   ;;  %s2160_s1 = inlined_call_operand.hbm [shape: f32[16,64], index: 1, kind: input, shape index: {}]   ;;  %s2161_s2 = inlined_call_operand.vmem [shape: f32[16,1], index: 2, kind: input, shape index: {}]   ;;  %s2162_s3 = inlined_call_operand.vmem [shape: f32[32,64], index: 3, kind: input, shape index: {}]   ;;  %s2163_s4 = inlined_call_operand.hbm [shape: f32[64,64], index: 4, kind: input, shape index: {}]   ;;  %s2164_s5 = inlined_call_operand.hbm [shape: f32[64,192], index: 5, kind: input, shape index: {}]   ;;  %s2165_s6 = inlined_call_operand.hbm [shape: f32[64,192], index: 6, kind: input, shape index: {}]   ;;  %s2166_s7 = inlined_call_operand.hbm [shape: f32[8,32], index: 7, kind: input, shape index: {}]   ;;  %s2167_s8 = inlined_call_operand.vmem [shape: f32[16,64], index: 8, kind: input, shape index: {}]   ;;  %s2168_s9 = inlined_call_operand.hbm [shape: f32[8,192], index: 9, kind: input, shape index: {}]   ;;  %s2169_s10 = inlined_call_operand.vmem [shape: f32[16,128], index: 10, kind: output, shape index: {}]  }
   0x1   :  { %2174 = sst [smem:[#allocation18_spill]] %s2161_s2 }
   0x2   :  { %2175 = sst [smem:[#allocation19_spill]] %s2163_s4 }
   0x3   :  { %2176 = sst [smem:[#allocation20_spill]] %s2164_s5 }
   0x4   :  { %2177 = sst [smem:[#allocation21_spill]] %s2169_s10 }
   0x5   :  { %15 = vsyncpa [#allocation3], 0 }
   0x6   :  { %17 = vsyncpa [#allocation3 + $0x1], 0 }
   0x7   :  { %18 = vsyncpa [#allocation5], 0 }
   0x8   :  { %20 = vsyncpa [#allocation5 + $0x1], 0 }
   0x9   :  { %21 = vsyncpa [#allocation8], 0 }
   0xa   :  { %22 = vsyncpa [#allocation11], 0  ;;  %s1776_s13 = smov 0   ;;  %s1778_s14 = smov 0  }
   0xb   :  { %s1780_s15 = smov 0   ;;  %s1782_s16 = smov 0  }
   0xc LB: > { %s1705_s17 = smov [#allocation6]   ;;  %s1797_s19 = sadd.s32 4294967295, %s1703_s16   ;;  %s1703_s16 = sphi %s1782_s16, %s2200_s16   ;;  %s1699_s15 = sphi %s1780_s15, %s2199_s15   ;;  %s1695_s14 = sphi %s1778_s14, %s2198_s14   ;;  %s1691_s13 = sphi %s1776_s13, %s2197_s13  }
   0xd   : > { %s299_s18 = sshll.u32 %s1705_s17, 4  ;;  %p1200_p0 = scmp.ge.s32.totalorder %s1703_s16, 1  ;;  %s1802_s18 = int_to_ptr.vmem [resolvable:$true] %s299_s18 }
   0xe   : > { %p2170_p1 = scmp.eq.s32.totalorder %s1797_s19, 0  ;;  %p284_p2 = scmp.lt.s32.totalorder %s1703_s16, 3 }
   0xf   : > { %s1706_s21 = smov [#allocation7]   ;;  %s1707_s24 = smov [#allocation10]  }
  0x10   : > { %p1804_p3 = pnand %p1200_p0, %p284_p2  ;;  %s312_s22 = sshll.u32 %s1706_s21, 4  ;;  %s1816_s22 = int_to_ptr.vmem [resolvable:$true] %s312_s22 }
  0x11   : > { %s1818_s25 = sshll.u32 %s1707_s24, 4  ;;  %s2180_s4 = sld [smem:[#allocation19_spill]]  ;;  %s340_s25 = int_to_ptr.vmem [resolvable:$true] %s1818_s25 }
  0x12   : > { %s2178_s20 = scalar_select %p1804_p3, 1, 0 }
  0x13   : > { %p1358_p4 = pneg %p1804_p3 }
  0x15   : > { %p1812_p5 = pnand %p1358_p4, %p2170_p1 }
  0x17   : > { %s1453_s28 = scalar_lea.hbm %s2180_s4, 1024  ;;  %p1828_p7 = pneg %p1812_p5 }
  0x18   : > { %p1454_p6 = scmp.ne.s32.totalorder %s2180_s4, %s1453_s28  ;;  %p1460_p10 = scmp.lt.u32.totalorder %s1453_s28, %s2180_s4 }
  0x1a   : > { %p1456_p8 = pnand %p1828_p7, %p1454_p6 }
  0x1c   : > { %p1457_p9 = pneg %p1456_p8 }
  0x1e   : > { %p1462_p11 = pnand %p1460_p10, %p1457_p9 }
  0x20   : > { %1465 = shalt.err (!%p1462_p11)
}
  0x21   : > { %s1466_s21 = scalar_lea.vmem %s1802_s18, 1024  ;;  %p1474_p2 = scmp.lt.s32.totalorder %s1802_s18, %s1802_s18 }
  0x22   : > { %p1467_p12 = scmp.ne.s32.totalorder %s1802_s18, %s1466_s21  ;;  %p1475_p4 = scmp.lt.s32.totalorder %s1466_s21, %s1466_s21 }
  0x24   : > { %p1469_p13 = pnand %p1467_p12, %p1828_p7  ;;  %p1476_p6 = por %p1475_p4, %p1474_p2 }
  0x26   : > { %p1470_p0 = pneg %p1469_p13 }
  0x28   : > { %p1477_p8 = pnand %p1476_p6, %p1470_p0 }
  0x2a   : > { %1480 = shalt.err (!%p1477_p8)
}
  0x2b   : > { %s1708_s24 = smov 128   ;;  %s1709_s26 = smov 8  }
  0x2c   : > { %1361 = dma.hbm_to_vmem [thread:$0]  (!%p1812_p5), %s2180_s4, 1024, %s1802_s18, [#allocation5], %s1708_s24, %s1708_s24, %s1709_s26  }
  0x2d   : > { %s2182_s5 = sld [smem:[#allocation20_spill]] }
  0x33   : > { %s1481_s12 = scalar_lea.hbm %s2182_s5, 2048 }
  0x34   : > { %p1482_p9 = scmp.ne.s32.totalorder %s2182_s5, %s1481_s12  ;;  %p1488_p12 = scmp.lt.u32.totalorder %s1481_s12, %s2182_s5 }
  0x36   : > { %p1484_p10 = pnand %p1482_p9, %p1828_p7 }
  0x38   : > { %p1485_p11 = pneg %p1484_p10 }
  0x3a   : > { %p1490_p13 = pnand %p1488_p12, %p1485_p11 }
  0x3c   : > { %1493 = shalt.err (!%p1490_p13)
}
  0x3d   : > { %s1494_s18 = scalar_lea.vmem %s1816_s22, 2048  ;;  %p1502_p6 = scmp.lt.s32.totalorder %s1816_s22, %s1816_s22 }
  0x3e   : > { %p1495_p0 = scmp.ne.s32.totalorder %s1816_s22, %s1494_s18  ;;  %p1503_p8 = scmp.lt.s32.totalorder %s1494_s18, %s1494_s18 }
  0x40   : > { %p1497_p2 = pnand %p1495_p0, %p1828_p7  ;;  %p1504_p9 = por %p1503_p8, %p1502_p6 }
  0x42   : > { %p1498_p4 = pneg %p1497_p2 }
  0x44   : > { %p1505_p10 = pnand %p1504_p9, %p1498_p4 }
  0x46   : > { %1508 = shalt.err (!%p1505_p10)
}
  0x47   : > { %s2172_s10 = smov 256   ;;  %s1711_s2 = smov 16  }
  0x48   : > { %1364 = dma.hbm_to_vmem [thread:$0]  (!%p1812_p5), %s2182_s5, 2048, %s1816_s22, [#allocation8], %s2172_s10, %s2172_s10, %s1711_s2  }
  0x49   : > { %s1509_s29 = scalar_lea.hbm %s2166_s7, 128 }
  0x4a   : > { %p1510_p11 = scmp.ne.s32.totalorder %s2166_s7, %s1509_s29  ;;  %p1516_p0 = scmp.lt.u32.totalorder %s1509_s29, %s2166_s7 }
  0x4c   : > { %p1512_p12 = pnand %p1510_p11, %p1828_p7 }
  0x4e   : > { %p1513_p13 = pneg %p1512_p12 }
  0x50   : > { %p1518_p2 = pnand %p1516_p0, %p1513_p13 }
  0x52   : > { %1521 = shalt.err (!%p1518_p2)
}
  0x53   : > { %s1522_s18 = scalar_lea.vmem %s340_s25, 128  ;;  %p1530_p9 = scmp.lt.s32.totalorder %s340_s25, %s340_s25 }
  0x54   : > { %p1523_p4 = scmp.ne.s32.totalorder %s340_s25, %s1522_s18  ;;  %p1531_p10 = scmp.lt.s32.totalorder %s1522_s18, %s1522_s18 }
  0x56   : > { %p1525_p6 = pnand %p1523_p4, %p1828_p7  ;;  %p1532_p1 = por %p1531_p10, %p1530_p9 }
  0x58   : > { %p1526_p8 = pneg %p1525_p6 }
  0x5a   : > { %p1533_p3 = pnand %p1532_p1, %p1526_p8 }
  0x5c   : > { %1536 = shalt.err (!%p1533_p3)
}
  0x5d   : > { %1370 = dma.hbm_to_vmem [thread:$0]  (!%p1812_p5), %s2166_s7, 128, %s340_s25, [#allocation11]  }
  0x5e   : > { %s1712_s26 = smov [#allocation9]   ;;  %s1713_s28 = smov [#allocation12]  }
  0x5f   : > { %s325_s27 = sshll.u32 %s1712_s26, 4  ;;  %s353_s29 = sshll.u32 %s1713_s28, 4  ;;  %s326_s27 = int_to_ptr.vmem [resolvable:$true] %s325_s27  ;;  %s354_s29 = int_to_ptr.vmem [resolvable:$true] %s353_s29 }
  0x60   : > { %s1537_s17 = scalar_lea.hbm %s2165_s6, 2048 }
  0x61   : > { %p1538_p1 = scmp.ne.s32.totalorder %s2165_s6, %s1537_s17  ;;  %p1544_p12 = scmp.lt.u32.totalorder %s1537_s17, %s2165_s6 }
  0x63   : > { %p1540_p3 = pnand %p1538_p1, %p1828_p7 }
  0x65   : > { %p1541_p11 = pneg %p1540_p3 }
  0x67   : > { %p1546_p13 = pnand %p1544_p12, %p1541_p11 }
  0x69   : > { %1549 = shalt.err (!%p1546_p13)
}
  0x6a   : > { %s1550_s25 = scalar_lea.vmem %s326_s27, 2048  ;;  %p1558_p6 = scmp.lt.s32.totalorder %s326_s27, %s326_s27 }
  0x6b   : > { %p1551_p0 = scmp.ne.s32.totalorder %s326_s27, %s1550_s25  ;;  %p1559_p8 = scmp.lt.s32.totalorder %s1550_s25, %s1550_s25 }
  0x6d   : > { %p1553_p2 = pnand %p1551_p0, %p1828_p7  ;;  %p1560_p9 = por %p1559_p8, %p1558_p6 }
  0x6f   : > { %p1554_p4 = pneg %p1553_p2 }
  0x71   : > { %p1561_p10 = pnand %p1560_p9, %p1554_p4 }
  0x73   : > { %1564 = shalt.err (!%p1561_p10)
}
  0x74   : > { %s2183_s24 = smov 256   ;;  %s1565_s12 = scalar_lea.hbm %s2168_s9, 256 }
  0x75   : > { %1367 = dma.hbm_to_vmem [thread:$0]  (!%p1812_p5), %s2165_s6, 2048, %s326_s27, [#allocation8], %s2183_s24, %s2183_s24, %s1711_s2  }
  0x76   : > { %p1566_p1 = scmp.ne.s32.totalorder %s2168_s9, %s1565_s12  ;;  %p1572_p12 = scmp.lt.u32.totalorder %s1565_s12, %s2168_s9 }
  0x78   : > { %p1568_p3 = pnand %p1566_p1, %p1828_p7 }
  0x7a   : > { %p1569_p11 = pneg %p1568_p3 }
  0x7c   : > { %p1574_p13 = pnand %p1572_p12, %p1569_p11 }
  0x7e   : > { %1577 = shalt.err (!%p1574_p13)
}
  0x7f   : > { %s1578_s25 = scalar_lea.vmem %s354_s29, 256  ;;  %p1586_p6 = scmp.lt.s32.totalorder %s354_s29, %s354_s29 }
  0x80   : > { %p1579_p0 = scmp.ne.s32.totalorder %s354_s29, %s1578_s25  ;;  %p1587_p8 = scmp.lt.s32.totalorder %s1578_s25, %s1578_s25 }
  0x82   : > { %p1581_p2 = pnand %p1579_p0, %p1828_p7  ;;  %p1588_p9 = por %p1587_p8, %p1586_p6 }
  0x84   : > { %p1582_p4 = pneg %p1581_p2 }
  0x86   : > { %p1589_p10 = pnand %p1588_p9, %p1582_p4 }
  0x88   : > { %1592 = shalt.err (!%p1589_p10)
}
  0x89   : > { %1373 = dma.hbm_to_vmem [thread:$0]  (!%p1812_p5), %s2168_s9, 256, %s354_s29, [#allocation11]  }
  0x8a   : > { %s1934_s11 = sadd.s32 1, %s1703_s16   ;;  %s35_s24 = sadd.s32 1, %s1699_s15 }
  0x8b   : > { %s32_s23 = ssub.s32 %s1703_s16, %s1934_s11  ;;  %p42_p1 = scmp.ne.s32.totalorder %s1699_s15, %s1695_s14 }
  0x8c   : > { %p33_p7 = scmp.eq.s32.totalorder %s32_s23, 0  ;;  %p43_p3 = scmp.eq.s32.totalorder %s1703_s16, 0 }
  0x8d   : > { %p48_p11 = scmp.ne.s32.totalorder %s1695_s14, %s1691_s13  ;;  %p2184_p13 = scmp.eq.s32.totalorder %s1797_s19, 0 }
  0x8e   : > { %s1945_s10 = scalar_select %p33_p7, %s1699_s15, %s35_s24  }
  0x8f   : > { %p44_p12 = por %p43_p3, %p42_p1  ;;  %p1949_p0 = por %p2184_p13, %p48_p11 }
  0x90   : > { %p1386_p2 = scmp.lt.s32.totalorder %s1703_s16, 2  ;;  %s364_s29 = sand.u32 1, %s1699_s15  }
  0x91   : > { %s2185_s26 = scalar_select %p1949_p0, 1, 0 }
  0x92   : > { %s1955_s28 = sshll.u32 %s364_s29, 3  ;;  %s1208_s30 = sshll.u32 %s1703_s16, 7 }
  0x93   : > { %s1961_s21 = scalar_lea.hbm %s2159_s0, %s1208_s30  ;;  %s368_s13 = scalar_lea.vmem [#allocation2], %s1955_s28 }
  0x94   : > { %s375_s18 = sshll.u32 %s368_s13, 4  ;;  %p1966_p5 = pnand %p1386_p2, %p44_p12  ;;  %s1964_s18 = int_to_ptr.vmem [resolvable:$true] %s375_s18 }
  0x95   : > { %s1973_s27 = scalar_lea.hbm %s2160_s1, %s1208_s30  ;;  %s382_s23 = sand.u32 1, %s1703_s16  }
  0x96   : > { %s365_s24 = scalar_lea.sflag [#allocation3], %s364_s29  ;;  %s1593_s12 = scalar_lea.hbm %s1961_s21, 128 }
  0x97   : > { %p1594_p4 = scmp.ne.s32.totalorder %s1961_s21, %s1593_s12  ;;  %p1595_p6 = pneg %p1966_p5 }
  0x98   : > { %s1598_s4 = scalar_lea.hbm %s2159_s0, 256  ;;  %p1599_p10 = scmp.lt.u32.totalorder %s1961_s21, %s2159_s0 }
  0x99   : > { %p1596_p8 = pnand %p1595_p6, %p1594_p4  ;;  %p1600_p7 = scmp.lt.u32.totalorder %s1598_s4, %s1593_s12 }
  0x9a   : > { %p1602_p3 = scmp.lt.u32.totalorder %s1593_s12, %s1961_s21 }
  0x9b   : > { %p1597_p9 = pneg %p1596_p8  ;;  %p1601_p1 = por %p1600_p7, %p1599_p10 }
  0x9d   : > { %p1603_p11 = por %p1602_p3, %p1601_p1 }
  0x9f   : > { %p1604_p12 = pnand %p1603_p11, %p1597_p9 }
  0xa1   : > { %1607 = shalt.err (!%p1604_p12)
}
  0xa2   : > { %s1608_s29 = scalar_lea.vmem %s1964_s18, 128  ;;  %s1714_s30 = smov [#allocation2]  }
  0xa3   : > { %p1609_p13 = scmp.ne.s32.totalorder %s1964_s18, %s1608_s29  ;;  %s1613_s2 = sshll.u32 %s1714_s30, 4  ;;  %s1614_s2 = int_to_ptr.vmem [resolvable:$false] %s1613_s2 }
  0xa4   : > { %s1615_s5 = scalar_lea.vmem %s1614_s2, 256  ;;  %p1616_p8 = scmp.lt.s32.totalorder %s1964_s18, %s1614_s2 }
  0xa5   : > { %p1611_p2 = pnand %p1609_p13, %p1595_p6  ;;  %p1617_p10 = scmp.lt.s32.totalorder %s1615_s5, %s1608_s29 }
  0xa7   : > { %p1612_p4 = pneg %p1611_p2  ;;  %p1618_p7 = por %p1617_p10, %p1616_p8 }
  0xa9   : > { %p1619_p1 = pnand %p1618_p7, %p1612_p4 }
  0xab   : > { %1622 = shalt.err (!%p1619_p1)
}
  0xac   : > { %1377 = dma.hbm_to_vmem [thread:$0]  (!%p1966_p5), %s1961_s21, 128, %s1964_s18, %s365_s24  }
  0xad   : > { %s386_s4 = scalar_lea.vmem [#allocation4], %s1955_s28  ;;  %s383_s17 = scalar_lea.sflag [#allocation5], %s382_s23 }
  0xae   : > { %s393_s12 = sshll.u32 %s386_s4, 4  ;;  %s1623_s13 = scalar_lea.hbm %s1973_s27, 128  ;;  %s394_s12 = int_to_ptr.vmem [resolvable:$true] %s393_s12 }
  0xaf   : > { %p1624_p9 = scmp.ne.s32.totalorder %s1973_s27, %s1623_s13  ;;  %s1628_s30 = scalar_lea.hbm %s2160_s1, 256 }
  0xb0   : > { %p1629_p12 = scmp.lt.u32.totalorder %s1973_s27, %s2160_s1  ;;  %p1630_p13 = scmp.lt.u32.totalorder %s1628_s30, %s1623_s13 }
  0xb1   : > { %p1626_p3 = pnand %p1624_p9, %p1595_p6  ;;  %p1632_p4 = scmp.lt.u32.totalorder %s1623_s13, %s1973_s27 }
  0xb2   : > { %p1631_p2 = por %p1630_p13, %p1629_p12 }
  0xb3   : > { %p1627_p11 = pneg %p1626_p3 }
  0xb4   : > { %p1633_p8 = por %p1632_p4, %p1631_p2 }
  0xb6   : > { %p1634_p10 = pnand %p1633_p8, %p1627_p11 }
  0xb8   : > { %1637 = shalt.err (!%p1634_p10)
}
  0xb9   : > { %s1638_s16 = scalar_lea.vmem %s394_s12, 128  ;;  %s1715_s28 = smov [#allocation4]  }
  0xba   : > { %p1639_p7 = scmp.ne.s32.totalorder %s394_s12, %s1638_s16  ;;  %s1643_s21 = sshll.u32 %s1715_s28, 4  ;;  %s1644_s21 = int_to_ptr.vmem [resolvable:$false] %s1643_s21 }
  0xbb   : > { %s1645_s18 = scalar_lea.vmem %s1644_s21, 256  ;;  %p1646_p3 = scmp.lt.s32.totalorder %s394_s12, %s1644_s21 }
  0xbc   : > { %p1641_p1 = pnand %p1639_p7, %p1595_p6  ;;  %p1647_p0 = scmp.lt.s32.totalorder %s1645_s18, %s1638_s16 }
  0xbe   : > { %p1642_p9 = pneg %p1641_p1  ;;  %p1648_p12 = por %p1647_p0, %p1646_p3 }
  0xc0   : > { %p1649_p13 = pnand %p1648_p12, %p1642_p9 }
  0xc2   : > { %1652 = shalt.err (!%p1649_p13)
}
  0xc3   : > { %1380 = dma.hbm_to_vmem [thread:$0]  (!%p1966_p5), %s1973_s27, 128, %s394_s12, %s383_s17  }
  0xc4   : > { %p2187_p11 = scmp.ne.s32.totalorder %s2178_s20, 0 }
  0xc5   : > { %s411_s23 = sand.u32 (!%p2187_p11), 1, %s1695_s14   ;;  %p2188_p6 = scmp.ne.s32.totalorder (!%p2187_p11), %s2185_s26, 0 }
  0xc6   : > { %409 = sbr.rel (%p2187_p11) target bundleno = 2891 (0xb4b), region = 60  ;;  %s2026_s24 = sshll.u32 (!%p2187_p11), %s411_s23, 3 }
  0xc7   : > { %s412_s4 = scalar_lea.sflag (!%p2187_p11), [#allocation3], %s411_s23  ;;  %s415_s13 = scalar_lea.vmem (!%p2187_p11), [#allocation2], %s2026_s24 }
  0xcd   : > { %1670 = dma.done.wait (%p2188_p6), %s412_s4, 128  }
  0xce   : > { %1672 = vsyncadd (%p2188_p6), %s412_s4, 4294967168  ;;  %s420_s22 = sand.u32 1, %s1797_s19   ;;  %s424_s20 = scalar_lea.vmem [#allocation4], %s2026_s24 }
  0xcf   : > { %s421_s27 = scalar_lea.sflag [#allocation5], %s420_s22 }
  0xd0   : > { %1674 = dma.done.wait (%p2188_p6), %s421_s27, 128  }
  0xd1   : > { %1676 = vsyncadd (%p2188_p6), %s421_s27, 4294967168  ;;  %p2189_p0 = scmp.eq.s32.totalorder %s1797_s19, 0 }
  0xd3   : > { %1678 = dma.done.wait (%p2189_p0), [#allocation5], 1024   ;;  %p2190_p5 = pmov %p2189_p0 }
  0xd4   : > { %p2191_p2 = pmov %p2189_p0 }
  0xd5   : > { %1680 = vsyncadd (%p2190_p5), [#allocation5], 4294966272 }
  0xd6   : > { %1682 = dma.done.wait (%p2191_p2), [#allocation8], 4096   ;;  %p2192_p4 = pmov %p2189_p0 }
  0xd7   : > { %p2193_p8 = pmov %p2189_p0 }
  0xd8   : > { %1684 = vsyncadd (%p2192_p4), [#allocation8], 4294963200 }
  0xd9   : > { %1686 = dma.done.wait (%p2193_p8), [#allocation11], 384   ;;  %p2194_p10 = pmov %p2189_p0 }
  0xda   : > { %vm508_vm0 = vcmask 261120   ;;  %v497_v0 = vld [vmem:[%s415_s13] sm:$0xff]  ;;  %v535_v9 = vld [vmem:[%s2162_s3 + $0x10] sm:$0xff]  ;;  %v1716_v10 = vmov 0.0|0.0   ;;  %v536_v12 = vld [vmem:[%s2162_s3 + $0x18] sm:$0xff]  ;;  %vm1717_vm1 = vmmov 0  }
  0xdb   : > { %1688 = vsyncadd (%p2194_p10), [#allocation11], 4294966912  ;;  %v509_v1 = vsel %vm508_vm0, %v497_v0, 0.0  ;;  %v533_v7 = vld [vmem:[%s2162_s3] sm:$0xff]  ;;  %v534_v8 = vld [vmem:[%s2162_s3 + $0x8] sm:$0xff]  ;;  %1284 = vmatprep.subr.bf16.mxu0 %v1716_v10  ;;  %v1718_v13 = vmov 0.0   ;;  %1290 = vmatprep.subr.bf16.mxu1 %v1716_v10  ;;  %v1288_v14 = vpack.c.bf16 %v536_v12, %v535_v9 }
  0xdc   : > { %510 = vadd.xlane.f32.xlu0 %v509_v1  ;;  %v1285_v11 = vpack.c.bf16 %v534_v8, %v533_v7  ;;  %1262 = vmatprep.mubr.msk.f32.mxu0 %vm1717_vm1, %v1718_v13  ;;  %v1221_v19 = vld [vmem:[#allocation10] ss:$0 sm:$0xff]  ;;  %v1222_v21 = vld [vmem:[#allocation10 + $0x1] ss:$0 sm:$0xff]  ;;  %vm618_vm2 = vcmask 523264   ;;  %v644_v36 = vld [vmem:[#allocation6 + $0x8] sm:$0xff] }
  0xdd   : > { %1281 = vmatprep.mubr.msk.f32.mxu1 %vm1717_vm1, %v1718_v13  ;;  %v1223_v24 = vld [vmem:[%s2167_s8] ss:$0 sm:$0xff]  ;;  %v645_v38 = vld [vmem:[#allocation6 + $0x10] sm:$0xff]  ;;  %v646_v39 = vld [vmem:[#allocation6 + $0x18] sm:$0xff]  ;;  %p489_p7 = scmp.lt.s32.totalorder %s1797_s19, 1  ;;  %v1719_v62 = vmov 0  }
  0xde   : > { %1286 = vmatpush3.bf16.msra.mxu0 %v1285_v11  ;;  %v643_v35 = vld [vmem:[#allocation6] sm:$0xff]  ;;  %v1294_v40 = vpack.c.bf16 %v646_v39, %v645_v38  ;;  %v648_v42 = vld [vmem:[#allocation6 + $0x28] sm:$0xff]  ;;  %v649_v44 = vld [vmem:[#allocation6 + $0x30] sm:$0xff]  ;;  %1438 = vset.pattern.permute.xlu0 %v1719_v62  ;;  %s2195_s17 = sld [smem:[#allocation18_spill]]  ;;  %s1720_s2 = smov 64   ;;  %vm1050_vm3 = vcmask 531968  }
  0xdf   : > { %1287 = vmatprep.subr.bf16.mxu0 %v1716_v10  ;;  %v1291_v37 = vpack.c.bf16 %v644_v36, %v643_v35  ;;  %v647_v41 = vld [vmem:[#allocation6 + $0x20] sm:$0xff]  ;;  %v650_v45 = vld [vmem:[#allocation6 + $0x38] sm:$0xff]  ;;  %s2202_s19 = smov (!%p489_p7, %s1797_s19), 1  ;;  %v756_v8 = vld [vmem:[#allocation7 + $0x8] sm:$0xff]  ;;  %s2196_s28 = sld [smem:[#allocation21_spill]] }
  0xe0   : > { %v1297_v43 = vpack.c.bf16 %v648_v42, %v647_v41  ;;  %v1300_v46 = vpack.c.bf16 %v650_v45, %v649_v44  ;;  %v1225_v51 = vld [vmem:[%s2167_s8 + $0x1] ss:$0 sm:$0xff]  ;;  %v1226_v53 = vld [vmem:[%s2167_s8 + $0x2] ss:$0 sm:$0xff]  ;;  %v1227_v56 = vld [vmem:[%s2167_s8 + $0x3] ss:$0 sm:$0xff] }
  0xe1   : > { %1292 = vmatpush3.bf16.msra.mxu1 %v1291_v37  ;;  %s1219_s27 = sshll.u32 %s2202_s19, 3  ;;  %v758_v9 = vld [vmem:[#allocation7 + $0x18] sm:$0xff]  ;;  %v859_v12 = vld [vmem:[#allocation9 + $0x10] sm:$0xff]  ;;  %v763_v37 = vld [vmem:[#allocation7 + $0x40] sm:$0xff] }
  0xe2   : > { %1289 = vmatpush3.bf16.msra.mxu0 %v1288_v14  ;;  %1293 = vmatprep.subr.bf16.mxu1 %v1716_v10  ;;  %v1302_v11 = vpack.c.bf16 %v758_v9, %v756_v8  ;;  %v757_v14 = vld [vmem:[#allocation7 + $0x10] sm:$0xff]  ;;  %v870_v41 = vld [vmem:[#allocation9 + $0x68] sm:$0xff]  ;;  %v872_v42 = vld [vmem:[#allocation9 + $0x78] sm:$0xff] }
  0xe3   : > { %v867_v36 = vld [vmem:[#allocation9 + $0x50] sm:$0xff]  ;;  %v768_v44 = vld [vmem:[#allocation7 + $0x68] sm:$0xff]  ;;  %v770_v45 = vld [vmem:[#allocation7 + $0x78] sm:$0xff] }
  0xe4   : > { %s492_s25 = scalar_lea.vmem %s2195_s17, %s1219_s27  ;;  %1303 = vmatprep.subr.bf16.mxu0 %v1302_v11  ;;  %v765_v38 = vld [vmem:[#allocation7 + $0x50] sm:$0xff]  ;;  %v1230_v62 = vld [vmem:[%s2167_s8 + $0x5] ss:$0 sm:$0xff] }
  0xe5   : > { %1295 = vmatpush3.bf16.msra.mxu1 %v1294_v40  ;;  %v499_v63 = vld [vmem:[%s492_s25] sm:$0xff]  ;;  %v1312_v40 = vpack.c.bf16 %v765_v38, %v763_v37  ;;  %v771_v8 = vld [vmem:[#allocation12] ss:$8 sm:$0x3]  ;;  %s2120_s21 = scalar_lea.vmem %s2196_s28, %s1219_s27 }
  0xe6   : > { %1296 = vmatprep.subr.bf16.mxu1 %v1716_v10 }
  0xe9   : > { %1298 = vmatpush3.bf16.msra.mxu1 %v1297_v43  ;;  %v1330_v43 = vpack.c.bf16 %v872_v42, %v870_v41 }
  0xea   : > { %1299 = vmatprep.subr.bf16.mxu1 %v1716_v10  ;;  %v857_v10 = vld [vmem:[#allocation9] sm:$0xff] }
  0xed   : > { %1301 = vmatpush3.bf16.msra.mxu1 %v1300_v46  ;;  %v869_v46 = vld [vmem:[#allocation9 + $0x60] sm:$0xff] }
 0x169   : > { %v511_v2 = vpop.xlane.xlu0 %510 }
 0x16a   : > { %v513_v3 = vmul.f32 0.03125, %v511_v2 }
 0x16c   : > { %v514_v4 = vsub.f32 %v497_v0, %v513_v3 }
 0x16e   : > { %v515_v5 = vmul.f32 %v514_v4, %v514_v4 }
 0x170   : > { %v516_v6 = vsel %vm508_vm0, %v515_v5, 0.0  ;;  %v858_v5 = vld [vmem:[#allocation9 + $0x8] sm:$0xff] }
 0x171   : > { %517 = vadd.xlane.f32.xlu0 %v516_v6  ;;  %v860_v6 = vld [vmem:[#allocation9 + $0x18] sm:$0xff] }
 0x172   : > { %v1318_v7 = vpack.c.bf16 %v860_v6, %v858_v5 }
 0x174   : > { %1319 = vmatprep.subr.bf16.mxu1 %v1318_v7  ;;  %v874_v7 = vld [vmem:[#allocation12 + $0x1] ss:$8 sm:$0x3] }
 0x1fe   : > { %v518_v15 = vpop.xlane.xlu0 %517 }
 0x1ff   : > { %v519_v16 = vmul.f32 0.03125, %v518_v15  ;;  %v1320_v15 = vpack.c.bf16 %v859_v12, %v857_v10 }
 0x201   : > { %v520_v17 = vadd.f32 1e-05, %v519_v16 }
 0x203   : > { %1439 = vrsqrt.f32 %v520_v17  ;;  %v862_v17 = vld [vmem:[#allocation9 + $0x28] sm:$0xff] }
 0x20d   : > { %v1440_v18 = vpop.eup %1439 }
 0x20e   : > { %v522_v20 = vmul.f32 %v1440_v18, %v514_v4  ;;  %v864_v18 = vld [vmem:[#allocation9 + $0x38] sm:$0xff] }
 0x210   : > { %v527_v22 = vmul.f32 %v1221_v19, %v522_v20  ;;  %v1322_v19 = vpack.c.bf16 %v864_v18, %v862_v17  ;;  %v760_v20 = vld [vmem:[#allocation7 + $0x28] sm:$0xff] }
 0x212   : > { %v532_v23 = vadd.f32 %v1222_v21, %v527_v22  ;;  %v762_v21 = vld [vmem:[#allocation7 + $0x38] sm:$0xff]  ;;  %v861_v22 = vld [vmem:[#allocation9 + $0x20] sm:$0xff] }
 0x214   : > { %1263 = vmatmul.mubr.msk.f32.vlgmr.msra.gmra.mrb[0].mxu0 %vm508_vm0, %v532_v23  ;;  %v1306_v23 = vpack.c.bf16 %v762_v21, %v760_v20 }
 0x215   : > { %850 = vmatprep.mubr.f32.mxu0 %v1718_v13 }
 0x2e7   : > { %v611_v25 = vpop.f32.mrb[0].mxu0 }
 0x2e8   : > { %v612_v26 = vadd.f32 %v1223_v24, %v611_v25  ;;  %v1264_v27 = vpop.f32.mrb[1].mxu0  ;;  %v863_v24 = vld [vmem:[#allocation9 + $0x30] sm:$0xff]  ;;  %v759_v25 = vld [vmem:[#allocation7 + $0x20] sm:$0xff] }
 0x2e9   : > { %v1324_v27 = vpack.c.bf16 %v863_v24, %v861_v22 }
 0x2ea   : > { %v615_v28 = vmax.f32 %v612_v26, 0.0  ;;  %v761_v26 = vld [vmem:[#allocation7 + $0x30] sm:$0xff] }
 0x2ec   : > { %v619_v29 = vsel %vm618_vm2, %v615_v28, 0.0 }
 0x2ed   : > { %620 = vadd.xlane.f32.xlu1 %v619_v29  ;;  %v866_v29 = vld [vmem:[#allocation9 + $0x48] sm:$0xff] }
 0x37a   : > { %v621_v30 = vpop.xlane.xlu1 %620 }
 0x37b   : > { %v623_v31 = vmul.f32 0.015625, %v621_v30  ;;  %v868_v30 = vld [vmem:[#allocation9 + $0x58] sm:$0xff] }
 0x37d   : > { %v624_v32 = vsub.f32 %v615_v28, %v623_v31  ;;  %v1308_v28 = vpack.c.bf16 %v761_v26, %v759_v25  ;;  %v1326_v31 = vpack.c.bf16 %v868_v30, %v866_v29 }
 0x37f   : > { %v625_v33 = vmul.f32 %v624_v32, %v624_v32 }
 0x381   : > { %v626_v34 = vsel %vm618_vm2, %v625_v33, 0.0  ;;  %v766_v33 = vld [vmem:[#allocation7 + $0x58] sm:$0xff] }
 0x382   : > { %627 = vadd.xlane.f32.xlu1 %v626_v34  ;;  %v865_v34 = vld [vmem:[#allocation9 + $0x40] sm:$0xff] }
 0x383   : > { %v1328_v39 = vpack.c.bf16 %v867_v36, %v865_v34  ;;  %v1235_v36 = vld [vmem:[%s2167_s8 + $0x7] ss:$0 sm:$0xff] }
 0x40f   : > { %v628_v47 = vpop.xlane.xlu1 %627 }
 0x410   : > { %v629_v48 = vmul.f32 0.015625, %v628_v47  ;;  %v1314_v47 = vpack.c.bf16 %v770_v45, %v768_v44 }
 0x412   : > { %v630_v49 = vadd.f32 1e-05, %v629_v48  ;;  %v871_v48 = vld [vmem:[#allocation9 + $0x70] sm:$0xff] }
 0x414   : > { %1441 = vrsqrt.f32 %v630_v49  ;;  %v498_v49 = vld [vmem:[%s424_s20] sm:$0xff] }
 0x41e   : > { %v1442_v50 = vpop.eup %1441 }
 0x41f   : > { %v632_v52 = vmul.f32 %v1442_v50, %v624_v32  ;;  %v764_v32 = vld [vmem:[#allocation7 + $0x48] sm:$0xff] }
 0x420   : > { %v1310_v35 = vpack.c.bf16 %v766_v33, %v764_v32 }
 0x421   : > { %v637_v54 = vmul.f32 %v1225_v51, %v632_v52  ;;  %v767_v51 = vld [vmem:[#allocation7 + $0x60] sm:$0xff]  ;;  %v1332_v52 = vpack.c.bf16 %v871_v48, %v869_v46 }
 0x423   : > { %v642_v55 = vadd.f32 %v1226_v53, %v637_v54  ;;  %v769_v53 = vld [vmem:[#allocation7 + $0x70] sm:$0xff] }
 0x425   : > { %1282 = vmatmul.mubr.msk.f32.vlgmr.msra.gmra.mrb[0].mxu1 %vm618_vm2, %v642_v55  ;;  %v1316_v55 = vpack.c.bf16 %v769_v53, %v767_v51 }
 0x426   : > { %953 = vmatprep.mubr.f32.mxu1 %v1718_v13  ;;  %v755_v13 = vld [vmem:[#allocation7] sm:$0xff]  ;;  %1321 = vmatpush1.bf16.msra.mxu1 %v1320_v15 }
 0x427   : > { %v1304_v16 = vpack.c.bf16 %v757_v14, %v755_v13  ;;  %1323 = vmatprep.subr.bf16.mxu1 %v1322_v19 }
 0x429   : > { %1305 = vmatpush1.bf16.msra.mxu0 %v1304_v16 }
 0x42a   : > { %1307 = vmatprep.subr.bf16.mxu0 %v1306_v23  ;;  %1325 = vmatpush1.bf16.msra.mxu1 %v1324_v27 }
 0x42b   : > { %1327 = vmatprep.subr.bf16.mxu1 %v1326_v31 }
 0x42d   : > { %1309 = vmatpush1.bf16.msra.mxu0 %v1308_v28 }
 0x42e   : > { %1311 = vmatprep.subr.bf16.mxu0 %v1310_v35  ;;  %1329 = vmatpush1.bf16.msra.mxu1 %v1328_v39  ;;  %v1234_v35 = vld [vmem:[%s2167_s8 + $0x6] ss:$0 sm:$0xff] }
 0x42f   : > { %1331 = vmatprep.subr.bf16.mxu1 %v1330_v43  ;;  %v1236_v43 = vld [vmem:[%s2167_s8 + $0x8] ss:$0 sm:$0xff] }
 0x431   : > { %1313 = vmatpush1.bf16.msra.mxu0 %v1312_v40 }
 0x432   : > { %1315 = vmatprep.subr.bf16.mxu0 %v1314_v47  ;;  %1333 = vmatpush1.bf16.msra.mxu1 %v1332_v52 }
 0x435   : > { %1317 = vmatpush1.bf16.msra.mxu0 %v1316_v55 }
 0x4f8   : > { %v725_v57 = vpop.f32.mrb[0].mxu1 }
 0x4f9   : > { %v726_v58 = vadd.f32 %v1227_v56, %v725_v57  ;;  %v1283_v59 = vpop.f32.mrb[1].mxu1 }
 0x4fb   : > { %v729_v60 = vmax.f32 %v726_v58, 0.0 }
 0x4fd   : > { %v732_v61 = vsel %vm618_vm2, %v729_v60, 0.0 }
 0x4fe   : > { %733 = vadd.xlane.f32.xlu0 %v732_v61 }
 0x514   : > { %502 = vperm.xlu0 %1438, %v499_v63  }
 0x58b   : > { %v734_v0 = vpop.xlane.xlu0 %733 }
 0x58c   : > { %v735_v1 = vmul.f32 0.015625, %v734_v0 }
 0x58e   : > { %v2096_v2 = vsub.f32 %v729_v60, %v735_v1  ;;  %v1229_v60 = vld [vmem:[%s2167_s8 + $0x4] ss:$0 sm:$0xff] }
 0x590   : > { %v737_v3 = vmul.f32 %v2096_v2, %v2096_v2 }
 0x592   : > { %v738_v4 = vsel %vm618_vm2, %v737_v3, 0.0 }
 0x593   : > { %739 = vadd.xlane.f32.xlu1 %v738_v4  ;;  %v503_v50 = vpop.permute.xlu0 %502  ;;  %v773_v4 = vlaneseq }
 0x594   : > { %v505_v54 = vmul.f32 %v503_v50, %v498_v49 }
 0x595   : > { %v774_v5 = vshrl.u32 %v773_v4, 7 }
 0x596   : > { %1232 = vmatmul.mubr.msk.f32.vlgmr.msra.gmra.mrb[2].mxu1 %vm618_vm2, %v505_v54 }
 0x597   : > { %v775_v6 = vsub.s32 0, %v774_v5  ;;  %v779_v18 = vsub.s32 1, %v774_v5 }
 0x599   : > { %v879_v9 = vrot.slane %v874_v7, %v775_v6  ;;  %v776_v10 = vrot.slane %v771_v8, %v775_v6  ;;  %v883_v19 = vrot.slane %v874_v7, %v779_v18  ;;  %v780_v20 = vrot.slane %v771_v8, %v779_v18 }
 0x620   : > { %v740_v56 = vpop.xlane.xlu1 %739 }
 0x621   : > { %v741_v57 = vmul.f32 0.015625, %v740_v56 }
 0x623   : > { %v742_v58 = vadd.f32 1e-05, %v741_v57  ;;  %v1237_v57 = vld [vmem:[%s2167_s8 + $0x9] ss:$0 sm:$0xff] }
 0x625   : > { %1443 = vrsqrt.f32 %v742_v58 }
 0x62f   : > { %v1444_v59 = vpop.eup %1443 }
 0x630   : > { %v744_v61 = vmul.f32 %v1444_v59, %v2096_v2 }
 0x632   : > { %v749_v63 = vmul.f32 %v1229_v60, %v744_v61 }
 0x634   : > { %v754_v0 = vadd.f32 %v1230_v62, %v749_v63 }
 0x636   : > { %1231 = vmatmul.mubr.msk.f32.vlgmr.msra.gmra.mrb[2].mxu0 %vm618_vm2, %v754_v0 }
 0x669   : > { %v955_v1 = vpop.f32.mrb[2].mxu1 }
 0x66a   : > { %v957_v3 = vpop.f32.mrb[3].mxu1  ;;  %v956_v11 = vadd.f32 %v955_v1, %v879_v9 }
 0x66b   : > { %v958_v21 = vadd.f32 %v957_v3, %v883_v19 }
 0x709   : > { %v852_v12 = vpop.f32.mrb[2].mxu0 }
 0x70a   : > { %v853_v2 = vadd.f32 %v852_v12, %v776_v10  ;;  %v854_v13 = vpop.f32.mrb[3].mxu0 }
 0x70b   : > { %v855_v24 = vadd.f32 %v854_v13, %v780_v20 }
 0x70c   : > { %v960_v14 = vadd.f32 %v956_v11, %v853_v2 }
 0x70e   : > { %v1233_v15 = vmul.f32 -1.442695, %v960_v14 }
 0x710   : > { %1445 = vpow2.f32 %v1233_v15 }
 0x71a   : > { %v1446_v16 = vpop.eup %1445 }
 0x71b   : > { %v964_v17 = vadd.f32 1.0, %v1446_v16 }
 0x71d   : > { %1447 = vrcp.f32 %v964_v17 }
 0x727   : > { %v1448_v22 = vpop.eup %1447 }
 0x728   : > { %v967_v23 = vmul.f32 %v1448_v22, %v958_v21  ;;  %v970_v28 = vsub.f32 1.0, %v1448_v22 }
 0x72a   : > { %v968_v25 = vadd.f32 %v967_v23, %v855_v24 }
 0x72c   : > { %1449 = vtanh.f32 %v968_v25 }
 0x736   : > { %v1450_v26 = vpop.eup %1449 }
 0x737   : > { %972 = vrot.lane.b32.xlu1 %v1450_v26, %s1720_s2 }
 0x73b   : > { %976 = vrot.lane.b32.xlu1 %v505_v54, %s1720_s2 }
 0x7a9   : > { %v973_v27 = vpop.permute.xlu1 %972 }
 0x7aa   : > { %v975_v30 = vmul.f32 %v973_v27, %v970_v28 }
 0x7ad   : > { %v977_v29 = vpop.permute.xlu1 %976 }
 0x7ae   : > { %v979_v31 = vmul.f32 %v1448_v22, %v977_v29 }
 0x7b0   : > { %v980_v32 = vadd.f32 %v979_v31, %v975_v30 }
 0x7b2   : > { %984 = vrot.lane.b32.xlu1 %v980_v32, %s1720_s2 }
 0x824   : > { %v985_v33 = vpop.permute.xlu1 %984 }
 0x825   : > { %1045 = vst.msk [vmem:[%s2120_s21] sm:$0xff] %vm618_vm2, %v985_v33  ;;  %v987_v34 = vsel %vm618_vm2, %v985_v33, 0.0 }
 0x826   : > { %988 = vadd.xlane.f32.xlu1 %v987_v34 }
 0x837   : > { %1009 = vrot.lane.b32.xlu1 %v1234_v35, %s1720_s2 }
 0x83b   : > { %1018 = vrot.lane.b32.xlu1 %v1235_v36, %s1720_s2 }
 0x8b3   : > { %v989_v37 = vpop.xlane.xlu1 %988 }
 0x8b4   : > { %v990_v38 = vmul.f32 0.015625, %v989_v37 }
 0x8b6   : > { %v991_v39 = vsub.f32 %v980_v32, %v990_v38 }
 0x8b7   : > { %v1010_v47 = vpop.permute.xlu1 %1009 }
 0x8b8   : > { %v992_v40 = vmul.f32 %v991_v39, %v991_v39 }
 0x8ba   : > { %994 = vrot.lane.b32.xlu0 %v992_v40, %s1720_s2 }
 0x8bb   : > { %v1019_v50 = vpop.permute.xlu1 %1018 }
 0x92c   : > { %v995_v41 = vpop.permute.xlu0 %994 }
 0x92d   : > { %v997_v42 = vsel %vm618_vm2, %v995_v41, 0.0 }
 0x92e   : > { %998 = vadd.xlane.f32.xlu0 %v997_v42 }
 0x944   : > { %1028 = vrot.lane.b32.xlu0 %v1236_v43, %s1720_s2 }
 0x9bb   : > { %v999_v44 = vpop.xlane.xlu0 %998 }
 0x9bc   : > { %v1000_v45 = vmul.f32 0.015625, %v999_v44 }
 0x9be   : > { %v1001_v46 = vadd.f32 1e-05, %v1000_v45 }
 0x9bf   : > { %v1029_v52 = vpop.permute.xlu0 %1028 }
 0x9c0   : > { %1451 = vrsqrt.f32 %v1001_v46 }
 0x9ca   : > { %v1452_v48 = vpop.eup %1451 }
 0x9cb   : > { %v1003_v49 = vmul.f32 %v1452_v48, %v991_v39 }
 0x9cd   : > { %v1012_v51 = vmul.f32 %v1010_v47, %v1003_v49 }
 0x9cf   : > { %v1021_v53 = vadd.f32 %v1019_v50, %v1012_v51 }
 0x9d1   : > { %v1031_v54 = vmul.f32 %v1029_v52, %v1021_v53 }
 0x9d3   : > { %1033 = vrot.lane.b32.xlu1 %v1031_v54, %s1720_s2 }
 0xa45   : > { %v1034_v55 = vpop.permute.xlu1 %1033 }
 0xa46   : > { %v1036_v56 = vsel %vm618_vm2, %v1034_v55, 0.0 }
 0xa47   : > { %1037 = vadd.xlane.f32.xlu1 %v1036_v56 }
 0xad4   : > { %v1038_v58 = vpop.xlane.xlu1 %1037 }
 0xad5   : > { %v1044_v59 = vadd.f32 %v1237_v57, %v1038_v58 }
 0xad7   : > { %1047 = vrot.lane.b32.xlu0 %v1044_v59, %s1720_s2 }
 0xb49   : > { %v1048_v60 = vpop.permute.xlu0 %1047 }
 0xb4a   : > { %1051 = vst.msk [vmem:[%s2120_s21] sm:$0xff] %vm1050_vm3, %v1048_v60 }
 0xb4b PF: > { %p25_p1 = scmp.ge.s32.totalorder %s1934_s11, 4   ;;  %s2197_s13 = smov %s1695_s14 }
 0xb4c   : > { %s2198_s14 = smov %s1699_s15  ;;  %s2199_s15 = smov %s1945_s10 }
 0xb4d   : > { %s2200_s16 = smov %s1934_s11  ;;  %27 = sbr.rel (!%p25_p1) target bundleno = 12 (0xc), region = 137 }
 0xb54   :  { %1071 = vsyncpa [#allocation3], 1 }
 0xb55   :  { %1073 = vsyncpa [#allocation3 + $0x1], 1 }
 0xb56   :  { %1074 = vsyncpa [#allocation5], 1 }
 0xb57   :  { %1076 = vsyncpa [#allocation5 + $0x1], 1 }
 0xb58   :  { %1077 = vsyncpa [#allocation8], 1 }
 0xb59   :  { %1078 = vsyncpa [#allocation11], 1 }

</bundles_post_ra>
